<compile_context>
chip_gen: v7x
topology: tpu7x:2x2x1
jax: 0.10.0
libtpu: 0.0.40
codegen_flags: <defaults>
</compile_context>

<pallas_src>
import functools

import jax
import jax.numpy as jnp
from jax.experimental import pallas as pl
from jax.experimental.pallas import tpu as pltpu

_EPS = 1e-7                     # matches sosiou_loss default
_DEFAULT_TM = 1024              # rows (of 128 boxes) per grid step
_VMEM_LIMIT = 32 * 1024 * 1024  # safe on v5e/v6e/v7x; footprint ~10 MiB @ TM=1024


def _round_up(x: int, m: int) -> int:
    return ((x + m - 1) // m) * m


# -----------------------------------------------------------------------------
# Kernels
# -----------------------------------------------------------------------------
def _per_box_loss(pred_ref, target_ref):
    """Per-box SOS-IoU loss on dense (TM, 128) tiles.

    pred_ref, target_ref: (4, TM, 128) f32 VMEM refs; pred_ref[c] is (TM, 128).
    """
    px1 = pred_ref[0]
    py1 = pred_ref[1]
    px2 = pred_ref[2]
    py2 = pred_ref[3]
    tx1 = target_ref[0]
    ty1 = target_ref[1]
    tx2 = target_ref[2]
    ty2 = target_ref[3]

    inter_w = jnp.maximum(jnp.minimum(px2, tx2) - jnp.maximum(px1, tx1), 0.0)
    inter_h = jnp.maximum(jnp.minimum(py2, ty2) - jnp.maximum(py1, ty1), 0.0)
    inter = inter_w * inter_h

    t_w = tx2 - tx1
    t_h = ty2 - ty1
    p_w = px2 - px1
    p_h = py2 - py1

    enclose_w_pow = (jnp.maximum(px2, tx2) - jnp.minimum(px1, tx1)) ** 2
    enclose_h_pow = (jnp.maximum(py2, ty2) - jnp.minimum(py1, ty1)) ** 2

    union = p_w * p_h + t_w * t_h - inter
    # Exact divides kept: kernel is HBM-bandwidth-bound, and approx reciprocal
    # drifts past the 1e-5 rtol budget.
    ious = inter / (union + _EPS)

    # NOTE: the reference derives BOTH centers from `pred`, so its
    # center-distance term is identically zero -> omitted (bit-identical).
    return (
        ious
        + (t_w - p_w) ** 2 / (enclose_w_pow + _EPS)
        + (t_h - p_h) ** 2 / (enclose_h_pow + _EPS)
    )


def _kernel_per_box(pred_ref, target_ref, loss_ref):
    loss_ref[...] = _per_box_loss(pred_ref, target_ref)


def _kernel_per_box_w(pred_ref, target_ref, w_ref, loss_ref):
    loss_ref[...] = _per_box_loss(pred_ref, target_ref) * w_ref[...]


def _tile_partial(loss):
    # (TM, 128) -> (TM//8, 8, 128) -> (8, 128): pure vreg adds (no lane moves).
    tm = loss.shape[0]
    return loss.reshape(tm // 8, 8, 128).sum(axis=0)


def _kernel_partial(pred_ref, target_ref, out_ref):
    out_ref[0] = _tile_partial(_per_box_loss(pred_ref, target_ref))


def _kernel_partial_w(pred_ref, target_ref, w_ref, out_ref):
    out_ref[0] = _tile_partial(_per_box_loss(pred_ref, target_ref) * w_ref[...])


# -----------------------------------------------------------------------------
# pallas_call builders
# -----------------------------------------------------------------------------
def _compiler_params(num_inputs):
    return pltpu.CompilerParams(
        # "parallel": no accumulator / no cross-step dependence, so the grid
        # axis may be sharded across TensorCores where supported.
        dimension_semantics=("parallel",),
        vmem_limit_bytes=_VMEM_LIMIT,
        # Let XLA fuse the transpose/pad/reshape packing into the operand DMA
        # instead of materializing a second HBM copy of the boxes.
        allow_input_fusion=[True] * num_inputs,
    )


def _call_per_box(pred_t, target_t, w_t, tm):
    """Per-box loss output (reduction='none'). Returns (rows_pad, 128) f32."""
    rows_pad = pred_t.shape[1]
    grid = (rows_pad // tm,)
    box_spec = pl.BlockSpec((4, tm, 128), lambda i: (0, i, 0))
    in_specs = [box_spec, box_spec]
    args = [pred_t, target_t]
    kernel = _kernel_per_box
    if w_t is not None:
        in_specs.append(pl.BlockSpec((tm, 128), lambda i: (i, 0)))
        args.append(w_t)
        kernel = _kernel_per_box_w
    return pl.pallas_call(
        kernel,
        grid=grid,
        in_specs=in_specs,
        out_specs=pl.BlockSpec((tm, 128), lambda i: (i, 0)),
        out_shape=jax.ShapeDtypeStruct((rows_pad, 128), jnp.float32),
        compiler_params=_compiler_params(len(args)),
    )(*args)


def _call_partial_sum(pred_t, target_t, w_t, tm):
    """Per-tile partial sums (reduction='sum'/'mean').

    Returns (n_tiles, 8, 128) f32; final reduce done in XLA.
    """
    rows_pad = pred_t.shape[1]
    n_tiles = rows_pad // tm
    box_spec = pl.BlockSpec((4, tm, 128), lambda i: (0, i, 0))
    in_specs = [box_spec, box_spec]
    args = [pred_t, target_t]
    kernel = _kernel_partial
    if w_t is not None:
        in_specs.append(pl.BlockSpec((tm, 128), lambda i: (i, 0)))
        args.append(w_t)
        kernel = _kernel_partial_w
    return pl.pallas_call(
        kernel,
        grid=(n_tiles,),
        in_specs=in_specs,
        out_specs=pl.BlockSpec((1, 8, 128), lambda i: (i, 0, 0)),
        out_shape=jax.ShapeDtypeStruct((n_tiles, 8, 128), jnp.float32),
        compiler_params=_compiler_params(len(args)),
    )(*args)


# -----------------------------------------------------------------------------
# Fully-jitted forward (cast + pack + kernel + reduce + scale in one program)
# -----------------------------------------------------------------------------
@functools.partial(jax.jit, static_argnames=("reduction", "loss_weight", "tm"))
def _forward_jit(pred, target, weight, avg_factor, *, reduction, loss_weight, tm):
    pred32 = jnp.asarray(pred, jnp.float32)
    target32 = jnp.asarray(target, jnp.float32)
    n = pred32.shape[0]

    any_pos = None
    early = None
    w_per_box = None
    if weight is not None:
        w32 = jnp.asarray(weight, jnp.float32)
        # forward(): "no positive weight at all" early return, made traceable.
        any_pos = jnp.any(w32 > 0)
        wb = w32[:, None] if pred32.ndim == w32.ndim + 1 else w32
        early = (pred32 * wb).sum()  # NOT scaled by loss_weight, as in torch
        if w32.ndim > 1:
            assert w32.shape == pred32.shape
            w_per_box = w32.mean(-1)
        else:
            w_per_box = w32

    # Lane-dense packing: (n, 4) -> (4, rows_pad, 128).
    rows = max(1, -(-n // 128))
    rows_pad = _round_up(rows, tm)
    n_pad = rows_pad * 128
    pred_t = jnp.pad(pred32.T, ((0, 0), (0, n_pad - n))).reshape(4, rows_pad, 128)
    target_t = jnp.pad(target32.T, ((0, 0), (0, n_pad - n))).reshape(
        4, rows_pad, 128
    )
    w_t = None
    if w_per_box is not None:
        w_t = jnp.pad(w_per_box, (0, n_pad - n)).reshape(rows_pad, 128)

    if reduction == "none":
        per_box = _call_per_box(pred_t, target_t, w_t, tm)
        # (caller guarantees at least one positive weight on this path)
        return loss_weight * per_box.reshape(-1)[:n]

    # 'sum' / 'mean': in-kernel per-tile partial sums, tiny final reduce here.
    partials = _call_partial_sum(pred_t, target_t, w_t, tm)
    total = jnp.sum(partials)  # padded lanes contribute exactly 0

    if reduction == "mean":
        if avg_factor is None:
            total = total / n
        else:
            total = total / (
                jnp.asarray(avg_factor, jnp.float32)
                + jnp.float32(jnp.finfo(jnp.float32).eps)
            )
    result = loss_weight * total

    if weight is not None:
        result = jnp.where(any_pos, result, early)
    return result


def sosiou_loss_forward(
    pred,
    target,
    weight=None,
    avg_factor=None,
    reduction="mean",
    reduction_override=None,
    loss_weight=1.0,
    tm=None,
):
    """SOSIoULoss.forward equivalent (no cls_scores/labels path).

    pred, target: (n, 4) boxes in (x1, y1, x2, y2) format.
    weight: optional (n,) or (n, 4) per-box weight.
    """
    # TODO(synk): cls_scores/labels branch (sigmoid + take gather) not
    # implemented; only the plain SOSIoU regression path is provided.
    assert reduction_override in (None, "none", "mean", "sum")
    reduction = reduction_override if reduction_override else reduction
    assert reduction in ("none", "mean", "sum")
    if reduction == "sum":
        assert avg_factor is None  # mmdet: avg_factor cannot be used with 'sum'

    n = int(pred.shape[0])
    rows = max(1, -(-n // 128))
    if tm is None:
        tm_eff = min(_DEFAULT_TM, _round_up(rows, 8))
    else:
        tm_eff = max(8, _round_up(int(tm), 8))

    if weight is not None and reduction == "none":
        # The early-return result is a SCALAR while the normal result is a
        # per-box vector, so the output shape is data-dependent: this single
        # host check is unavoidable for reduction='none'.  (sum/mean paths
        # are fully traced via jnp.where inside _forward_jit.)
        w32 = jnp.asarray(weight, jnp.float32)
        if not bool(jnp.any(w32 > 0)):
            p32 = jnp.asarray(pred, jnp.float32)
            wb = w32[:, None] if p32.ndim == w32.ndim + 1 else w32
            return (p32 * wb).sum()

    return _forward_jit(
        pred,
        target,
        weight,
        avg_factor,
        reduction=reduction,
        loss_weight=float(loss_weight),
        tm=tm_eff,
    )


# -----------------------------------------------------------------------------
# Pure-jnp reference + self-test
# -----------------------------------------------------------------------------
def _reference(pred, target):
    """Pure-jnp reference mirroring the PyTorch code (per-box loss)."""
    px1, py1, px2, py2 = pred[:, 0], pred[:, 1], pred[:, 2], pred[:, 3]
    tx1, ty1, tx2, ty2 = target[:, 0], target[:, 1], target[:, 2], target[:, 3]
    inter = jnp.clip(jnp.minimum(px2, tx2) - jnp.maximum(px1, tx1), 0) * jnp.clip(
        jnp.minimum(py2, ty2) - jnp.maximum(py1, ty1), 0
    )
    t_w, t_h = tx2 - tx1, ty2 - ty1
    p_w, p_h = px2 - px1, py2 - py1
    t_c = (pred[:, :2] + pred[:, 2:]) / 2
    p_c = (pred[:, :2] + pred[:, 2:]) / 2
    ew = (jnp.maximum(px2, tx2) - jnp.minimum(px1, tx1)) ** 2
    eh = (jnp.maximum(py2, ty2) - jnp.minimum(py1, ty1)) ** 2
    union = p_w * p_h + t_w * t_h - inter
    ious = inter / (union + _EPS)
    return (
        ious
        + ((t_c - p_c) ** 2).sum(1) / (ew + eh + _EPS)
        + (t_w - p_w) ** 2 / (ew + _EPS)
        + (t_h - p_h) ** 2 / (eh + _EPS)
    )


def _make_boxes(key, n):
    k1, k2 = jax.random.split(key)
    xy = jax.random.uniform(k1, (n, 2), minval=0.0, maxval=10.0)
    wh = jax.random.uniform(k2, (n, 2), minval=1.0, maxval=5.0)
    return jnp.concatenate([xy, xy + wh], axis=1)


if __name__ == "__main__":
    key = jax.random.PRNGKey(0)
    kp, kt, kw, kp2, kt2 = jax.random.split(key, 5)

    # --- small case (default module config: reduction='mean') -----------------
    n = 8
    pred = _make_boxes(kp, n)
    target = _make_boxes(kt, n)

    loss_mean = sosiou_loss_forward(pred, target, reduction="mean")
    jax.block_until_ready(loss_mean)

    loss_none = sosiou_loss_forward(pred, target, reduction="none")
    jax.block_until_ready(loss_none)

    ref_none = _reference(pred, target)
    assert jnp.allclose(loss_none, ref_none, rtol=1e-5, atol=1e-5)
    assert jnp.allclose(loss_mean, ref_none.mean(), rtol=1e-5, atol=1e-5)

    # --- weighted: sum reduction (partial-sum kernel) + 'none' (per-box) ------
    w = jax.random.uniform(kw, (n,), minval=0.1, maxval=1.0)
    loss_sum_w = sosiou_loss_forward(pred, target, weight=w, reduction="sum")
    jax.block_until_ready(loss_sum_w)
    assert jnp.allclose(loss_sum_w, (ref_none * w).sum(), rtol=1e-5, atol=1e-5)

    loss_none_w = sosiou_loss_forward(pred, target, weight=w, reduction="none")
    jax.block_until_ready(loss_none_w)
    assert jnp.allclose(loss_none_w, ref_none * w, rtol=1e-5, atol=1e-5)

    # --- all-zero weight early-return path (traced jnp.where branch) ----------
    zero_w = jnp.zeros((n,), jnp.float32)
    loss_zero = sosiou_loss_forward(pred, target, weight=zero_w)
    jax.block_until_ready(loss_zero)
    assert jnp.allclose(loss_zero, 0.0)

    # --- multi-tile case (forces grid > 1 with a small tile) ------------------
    n2 = 1500
    pred2 = _make_boxes(kp2, n2)
    target2 = _make_boxes(kt2, n2)
    loss2 = sosiou_loss_forward(
        pred2, target2, reduction="mean", avg_factor=float(n2), tm=8
    )
    jax.block_until_ready(loss2)
    ref2 = _reference(pred2, target2).mean()
    assert jnp.allclose(loss2, ref2, rtol=1e-5, atol=1e-5)

    loss2_none = sosiou_loss_forward(pred2, target2, reduction="none", tm=8)
    jax.block_until_ready(loss2_none)
    assert jnp.allclose(loss2_none, _reference(pred2, target2), rtol=1e-5, atol=1e-5)

    print("KERNEL_OK")
</pallas_src>

<mosaic_0001>
module attributes {stable_mosaic.version = 11 : i64} {
  func.func @_kernel_partial(%arg0: i32, %arg1: memref<4x8x128xf32, #tpu.memory_space<vmem>>, %arg2: memref<4x8x128xf32, #tpu.memory_space<vmem>>, %arg3: memref<1x8x128xf32, #tpu.memory_space<vmem>>) attributes {dimension_semantics = [#tpu.dimension_semantics<parallel>], iteration_bounds = array<i64: 1>, scalar_prefetch = 0 : i64, scratch_operands = 0 : i64, tpu.core_type = #tpu.core_type<tc>, window_params = [{transform_indices = @transform_0, window_bounds = array<i64: 4, 8, 128>}, {transform_indices = @transform_1, window_bounds = array<i64: 4, 8, 128>}, {transform_indices = @transform_2, window_bounds = array<i64: 1, 8, 128>}]} {
    %c0 = arith.constant 0 : index
    %c0_0 = arith.constant 0 : index
    %c0_1 = arith.constant 0 : index
    %0 = vector.load %arg1[%c0, %c0_0, %c0_1] : memref<4x8x128xf32, #tpu.memory_space<vmem>>, vector<1x8x128xf32>
    %1 = vector.shape_cast %0 : vector<1x8x128xf32> to vector<8x128xf32>
    %c1 = arith.constant 1 : index
    %c0_2 = arith.constant 0 : index
    %c0_3 = arith.constant 0 : index
    %2 = vector.load %arg1[%c1, %c0_2, %c0_3] : memref<4x8x128xf32, #tpu.memory_space<vmem>>, vector<1x8x128xf32>
    %3 = vector.shape_cast %2 : vector<1x8x128xf32> to vector<8x128xf32>
    %c2 = arith.constant 2 : index
    %c0_4 = arith.constant 0 : index
    %c0_5 = arith.constant 0 : index
    %4 = vector.load %arg1[%c2, %c0_4, %c0_5] : memref<4x8x128xf32, #tpu.memory_space<vmem>>, vector<1x8x128xf32>
    %5 = vector.shape_cast %4 : vector<1x8x128xf32> to vector<8x128xf32>
    %c3 = arith.constant 3 : index
    %c0_6 = arith.constant 0 : index
    %c0_7 = arith.constant 0 : index
    %6 = vector.load %arg1[%c3, %c0_6, %c0_7] : memref<4x8x128xf32, #tpu.memory_space<vmem>>, vector<1x8x128xf32>
    %7 = vector.shape_cast %6 : vector<1x8x128xf32> to vector<8x128xf32>
    %c0_8 = arith.constant 0 : index
    %c0_9 = arith.constant 0 : index
    %c0_10 = arith.constant 0 : index
    %8 = vector.load %arg2[%c0_8, %c0_9, %c0_10] : memref<4x8x128xf32, #tpu.memory_space<vmem>>, vector<1x8x128xf32>
    %9 = vector.shape_cast %8 : vector<1x8x128xf32> to vector<8x128xf32>
    %c1_11 = arith.constant 1 : index
    %c0_12 = arith.constant 0 : index
    %c0_13 = arith.constant 0 : index
    %10 = vector.load %arg2[%c1_11, %c0_12, %c0_13] : memref<4x8x128xf32, #tpu.memory_space<vmem>>, vector<1x8x128xf32>
    %11 = vector.shape_cast %10 : vector<1x8x128xf32> to vector<8x128xf32>
    %c2_14 = arith.constant 2 : index
    %c0_15 = arith.constant 0 : index
    %c0_16 = arith.constant 0 : index
    %12 = vector.load %arg2[%c2_14, %c0_15, %c0_16] : memref<4x8x128xf32, #tpu.memory_space<vmem>>, vector<1x8x128xf32>
    %13 = vector.shape_cast %12 : vector<1x8x128xf32> to vector<8x128xf32>
    %c3_17 = arith.constant 3 : index
    %c0_18 = arith.constant 0 : index
    %c0_19 = arith.constant 0 : index
    %14 = vector.load %arg2[%c3_17, %c0_18, %c0_19] : memref<4x8x128xf32, #tpu.memory_space<vmem>>, vector<1x8x128xf32>
    %15 = vector.shape_cast %14 : vector<1x8x128xf32> to vector<8x128xf32>
    %16 = arith.minimumf %5, %13 : vector<8x128xf32>
    %17 = arith.maximumf %1, %9 : vector<8x128xf32>
    %18 = arith.subf %16, %17 : vector<8x128xf32>
    %cst = arith.constant 0.000000e+00 : f32
    %19 = vector.broadcast %cst : f32 to vector<8x128xf32>
    %20 = arith.maximumf %18, %19 : vector<8x128xf32>
    %21 = arith.minimumf %7, %15 : vector<8x128xf32>
    %22 = arith.maximumf %3, %11 : vector<8x128xf32>
    %23 = arith.subf %21, %22 : vector<8x128xf32>
    %cst_20 = arith.constant 0.000000e+00 : f32
    %24 = vector.broadcast %cst_20 : f32 to vector<8x128xf32>
    %25 = arith.maximumf %23, %24 : vector<8x128xf32>
    %26 = arith.mulf %20, %25 : vector<8x128xf32>
    %27 = arith.subf %13, %9 : vector<8x128xf32>
    %28 = arith.subf %15, %11 : vector<8x128xf32>
    %29 = arith.subf %5, %1 : vector<8x128xf32>
    %30 = arith.subf %7, %3 : vector<8x128xf32>
    %31 = arith.maximumf %5, %13 : vector<8x128xf32>
    %32 = arith.minimumf %1, %9 : vector<8x128xf32>
    %33 = arith.subf %31, %32 : vector<8x128xf32>
    %34 = arith.mulf %33, %33 : vector<8x128xf32>
    %35 = arith.maximumf %7, %15 : vector<8x128xf32>
    %36 = arith.minimumf %3, %11 : vector<8x128xf32>
    %37 = arith.subf %35, %36 : vector<8x128xf32>
    %38 = arith.mulf %37, %37 : vector<8x128xf32>
    %39 = arith.mulf %29, %30 : vector<8x128xf32>
    %40 = arith.mulf %27, %28 : vector<8x128xf32>
    %41 = arith.addf %39, %40 : vector<8x128xf32>
    %42 = arith.subf %41, %26 : vector<8x128xf32>
    %cst_21 = arith.constant 1.000000e-07 : f32
    %43 = vector.broadcast %cst_21 : f32 to vector<8x128xf32>
    %44 = arith.addf %42, %43 : vector<8x128xf32>
    %45 = arith.divf %26, %44 : vector<8x128xf32>
    %46 = arith.subf %27, %29 : vector<8x128xf32>
    %47 = arith.mulf %46, %46 : vector<8x128xf32>
    %cst_22 = arith.constant 1.000000e-07 : f32
    %48 = vector.broadcast %cst_22 : f32 to vector<8x128xf32>
    %49 = arith.addf %34, %48 : vector<8x128xf32>
    %50 = arith.divf %47, %49 : vector<8x128xf32>
    %51 = arith.addf %45, %50 : vector<8x128xf32>
    %52 = arith.subf %28, %30 : vector<8x128xf32>
    %53 = arith.mulf %52, %52 : vector<8x128xf32>
    %cst_23 = arith.constant 1.000000e-07 : f32
    %54 = vector.broadcast %cst_23 : f32 to vector<8x128xf32>
    %55 = arith.addf %38, %54 : vector<8x128xf32>
    %56 = arith.divf %53, %55 : vector<8x128xf32>
    %57 = arith.addf %51, %56 : vector<8x128xf32>
    %58 = vector.shape_cast %57 : vector<8x128xf32> to vector<1x8x128xf32>
    %cst_24 = arith.constant dense<0.000000e+00> : vector<8x128xf32>
    %59 = vector.multi_reduction <add>, %58, %cst_24 [0] : vector<1x8x128xf32> to vector<8x128xf32>
    %c0_25 = arith.constant 0 : index
    %c0_26 = arith.constant 0 : index
    %c0_27 = arith.constant 0 : index
    %60 = vector.load %arg3[%c0_25, %c0_26, %c0_27] : memref<1x8x128xf32, #tpu.memory_space<vmem>>, vector<1x8x128xf32>
    %61 = vector.shape_cast %60 : vector<1x8x128xf32> to vector<8x128xf32>
    %62 = vector.shape_cast %59 : vector<8x128xf32> to vector<1x8x128xf32>
    tpu.vector_store %arg3[%c0_25, %c0_26, %c0_27], %62 {strides = array<i32>} : memref<1x8x128xf32, #tpu.memory_space<vmem>>, vector<1x8x128xf32>,
    return
  }
  func.func @transform_0(%arg0: i32) -> (i32, i32, i32) {
    %c0_i32 = arith.constant 0 : i32
    %c0_i32_0 = arith.constant 0 : i32
    %c0_i32_1 = arith.constant 0 : i32
    return %c0_i32, %arg0, %c0_i32_0 : i32, i32, i32
  }
  func.func @transform_1(%arg0: i32) -> (i32, i32, i32) {
    %c0_i32 = arith.constant 0 : i32
    %c0_i32_0 = arith.constant 0 : i32
    %c0_i32_1 = arith.constant 0 : i32
    return %c0_i32, %arg0, %c0_i32_0 : i32, i32, i32
  }
  func.func @transform_2(%arg0: i32) -> (i32, i32, i32) {
    %c0_i32 = arith.constant 0 : i32
    %c0_i32_0 = arith.constant 0 : i32
    %c0_i32_1 = arith.constant 0 : i32
    return %arg0, %c0_i32, %c0_i32_0 : i32, i32, i32
  }
}

</mosaic_0001>

<bundles_post_ra>
// kernel: _forward_jit.2
= control target key start
LH: loop header
LB: loop body
LE: loop exit
PB: predicated region body
PF: predicated region fallthrough
CT: control target
= control target key end

     0   :  { %s161_s0 = inlined_call_operand.vmem [shape: f32[1,4,8,128], index: 0, kind: input, shape index: {}]   ;;  %s162_s1 = inlined_call_operand.vmem [shape: f32[1,4,8,128], index: 1, kind: input, shape index: {}]   ;;  %s163_s2 = inlined_call_operand.vmem [shape: f32[1,8,128], index: 2, kind: output, shape index: {}]  }
   0x1   :  { %v11_v0 = vld [vmem:[%s162_s1] sm:$0xff]  ;;  %v107_v1 = vld [vmem:[%s162_s1 + $0x8] sm:$0xff]  ;;  %v108_v2 = vld [vmem:[%s162_s1 + $0x10] sm:$0xff] }
   0x2   :  { %v109_v3 = vld [vmem:[%s162_s1 + $0x18] sm:$0xff]  ;;  %v29_v4 = vld [vmem:[%s161_s0] sm:$0xff]  ;;  %v110_v5 = vld [vmem:[%s161_s0 + $0x8] sm:$0xff]  ;;  %v72_v6 = vsub.f32 %v108_v2, %v11_v0 }
   0x3   :  { %v111_v7 = vld [vmem:[%s161_s0 + $0x10] sm:$0xff]  ;;  %v112_v8 = vld [vmem:[%s161_s0 + $0x18] sm:$0xff]  ;;  %v62_v9 = vmax.f32 %v11_v0, %v29_v4  ;;  %v66_v10 = vmax.f32 %v107_v1, %v110_v5  ;;  %v73_v11 = vsub.f32 %v109_v3, %v107_v1  ;;  %v75_v12 = vmin.f32 %v11_v0, %v29_v4 }
   0x4   :  { %v61_v13 = vmin.f32 %v108_v2, %v111_v7  ;;  %v65_v14 = vmin.f32 %v109_v3, %v112_v8  ;;  %v70_v15 = vsub.f32 %v111_v7, %v29_v4  ;;  %v71_v16 = vsub.f32 %v112_v8, %v110_v5 }
   0x5   :  { %v74_v17 = vmax.f32 %v108_v2, %v111_v7  ;;  %v78_v18 = vmax.f32 %v109_v3, %v112_v8  ;;  %v79_v19 = vmin.f32 %v107_v1, %v110_v5  ;;  %v82_v20 = vmul.f32 %v73_v11, %v72_v6 }
   0x6   :  { %v63_v21 = vsub.f32 %v61_v13, %v62_v9  ;;  %v67_v22 = vsub.f32 %v65_v14, %v66_v10  ;;  %v83_v23 = vmul.f32 %v71_v16, %v70_v15  ;;  %v89_v36 = vsub.f32 %v70_v15, %v72_v6 }
   0x7   :  { %v76_v24 = vsub.f32 %v74_v17, %v75_v12  ;;  %v80_v25 = vsub.f32 %v78_v18, %v79_v19  ;;  %v95_v37 = vsub.f32 %v71_v16, %v73_v11 }
   0x8   :  { %v64_v26 = vmax.f32 %v63_v21, 0.0  ;;  %v68_v27 = vmax.f32 %v67_v22, 0.0  ;;  %v84_v28 = vadd.f32 %v83_v23, %v82_v20  ;;  %v90_v38 = vmul.f32 %v89_v36, %v89_v36 }
   0x9   :  { %v77_v29 = vmul.f32 %v76_v24, %v76_v24  ;;  %v81_v30 = vmul.f32 %v80_v25, %v80_v25  ;;  %v96_v40 = vmul.f32 %v95_v37, %v95_v37 }
   0xa   :  { %v69_v31 = vmul.f32 %v68_v27, %v64_v26 }
   0xb   :  { %v91_v32 = vadd.f32 1e-07, %v77_v29  ;;  %v97_v33 = vadd.f32 1e-07, %v81_v30 }
   0xc   :  { %v85_v34 = vsub.f32 %v84_v28, %v69_v31 }
   0xd   :  { %113 = vrcp.f32 %v91_v32 }
   0xe   :  { %v86_v35 = vadd.f32 1e-07, %v85_v34  ;;  %115 = vrcp.f32 %v97_v33 }
  0x10   :  { %117 = vrcp.f32 %v86_v35 }
  0x17   :  { %v114_v39 = vpop.eup %113 }
  0x18   :  { %v116_v41 = vpop.eup %115  ;;  %v93_v42 = vmul.f32 %v114_v39, %v90_v38 }
  0x19   :  { %v99_v45 = vmul.f32 %v116_v41, %v96_v40 }
  0x1a   :  { %v118_v43 = vpop.eup %117 }
  0x1b   :  { %v88_v44 = vmul.f32 %v118_v43, %v69_v31 }
  0x1d   :  { %v94_v46 = vadd.f32 %v93_v42, %v88_v44 }
  0x1f   :  { %v100_v47 = vadd.f32 %v99_v45, %v94_v46 }
  0x21   :  { %102 = vst [vmem:[%s163_s2] sm:$0xff] %v100_v47 }

</bundles_post_ra>
